<compile_context>
chip_gen: v7x
topology: tpu7x:2x2x1
jax: 0.10.0
libtpu: 0.0.40
codegen_flags: <defaults>
</compile_context>

<pallas_src>
import jax
import jax.numpy as jnp
from jax import lax
from jax.experimental import pallas as pl
from jax.experimental.pallas import tpu as pltpu


def _round_up(x, m):
    return ((x + m - 1) // m) * m


def cbow_kernel(idx_ref, emb_ref, wt_ref, bias_ref, out_ref):
    # idx_ref : VMEM (TB, C) int32   -- context token ids for this batch tile
    # emb_ref : VMEM (V, E)  f32     -- embedding table (row 0 = padding, zeroed)
    # wt_ref  : VMEM (E, V)  f32     -- linear weight, transposed and pre-scaled by 1/C
    # bias_ref: VMEM (1, V)  f32
    # out_ref : VMEM (TB, V) f32     -- logits tile
    TB, C = idx_ref.shape
    V, _ = emb_ref.shape

    idx = idx_ref[...]                                        # (TB, C) int32
    vocab_ids = lax.broadcasted_iota(jnp.int32, (TB, V), 1)   # lane index = vocab id

    # counts[b, v] = number of times token v appears in context b.
    # Static unroll over C (small); each step is one (TB, V) VPU compare + add.
    counts = jnp.zeros((TB, V), jnp.float32)
    for c in range(C):
        counts = counts + (vocab_ids == idx[:, c:c + 1]).astype(jnp.float32)

    # Sum of context embeddings via the MXU: (TB, V) @ (V, E) -> (TB, E).
    h_sum = jnp.dot(counts, emb_ref[...], preferred_element_type=jnp.float32)

    # Logits: the 1/C mean scale is already folded into wt_ref on the host.
    logits = jnp.dot(h_sum, wt_ref[...], preferred_element_type=jnp.float32)
    logits = logits + bias_ref[...]
    out_ref[...] = logits.astype(out_ref.dtype)


def cbow_forward(indices, emb_weight, out_weight, out_bias, *, tb=None):
    B, C = indices.shape
    V, E = emb_weight.shape

    # Batch tile: multiple of 8 (f32 sublane); cap at 128 (MXU height on v5e,
    # already plenty for v6e/v7x at these sizes).
    if tb is None:
        tb = min(128, _round_up(B, 8))
    B_pad = _round_up(B, tb)

    # Pad batch with token 0 (padding row is zero); padded rows are sliced off.
    idx_pad = jnp.zeros((B_pad, C), jnp.int32).at[:B].set(indices.astype(jnp.int32))

    # Fold the mean's 1/C into the pre-transposed linear weight.
    wt = (out_weight.T * (1.0 / C)).astype(jnp.float32)       # (E, V)
    bias2d = out_bias.reshape(1, V).astype(jnp.float32)

    out = pl.pallas_call(
        cbow_kernel,
        out_shape=jax.ShapeDtypeStruct((B_pad, V), jnp.float32),
        grid=(B_pad // tb,),
        in_specs=[
            pl.BlockSpec((tb, C), lambda i: (i, 0)),
            # Constant operands: whole array resident in VMEM, no per-step
            # pipelining (and no double-buffered second copy).
            pl.BlockSpec(memory_space=pltpu.MemorySpace.VMEM),   # emb (V, E)
            pl.BlockSpec(memory_space=pltpu.MemorySpace.VMEM),   # wt  (E, V)
            pl.BlockSpec(memory_space=pltpu.MemorySpace.VMEM),   # bias (1, V)
        ],
        out_specs=pl.BlockSpec((tb, V), lambda i: (i, 0)),
        compiler_params=pltpu.CompilerParams(
            dimension_semantics=("parallel",)),
    )(idx_pad, emb_weight.astype(jnp.float32), wt, bias2d)

    return out[:B]


def cbow_reference(indices, emb_weight, out_weight, out_bias):
    em = emb_weight[indices]                 # (B, C, E)
    h = jnp.mean(em, axis=1)                 # (B, E)
    return h @ out_weight.T + out_bias       # (B, V)


if __name__ == "__main__":
    em_size = 32
    v_size = 64
    batch = 2
    context = 8

    key = jax.random.PRNGKey(0)
    k_idx, k_emb, k_w, k_b = jax.random.split(key, 4)

    # Embedding weight: normal(0, 1) with padding_idx=0 row zeroed.
    emb_weight = jax.random.normal(k_emb, (v_size, em_size), jnp.float32)
    emb_weight = emb_weight.at[0].set(0.0)

    # Linear layer params.
    # NOTE: the original init_param() zeroes the linear weight after xavier init;
    # we use a deterministic nonzero xavier-style init so the matmul is exercised.
    # TODO(synk): set out_weight to zeros to match the (degenerate) PyTorch init exactly.
    xavier_std = (2.0 / (em_size + v_size)) ** 0.5
    out_weight = xavier_std * jax.random.normal(k_w, (v_size, em_size), jnp.float32)
    bound = 1.0 / (em_size ** 0.5)
    out_bias = jax.random.uniform(k_b, (v_size,), jnp.float32, -bound, bound)

    indices = jax.random.randint(k_idx, (batch, context), 0, v_size, jnp.int32)

    out = cbow_forward(indices, emb_weight, out_weight, out_bias)
    out = jax.block_until_ready(out)

    ref = cbow_reference(indices, emb_weight, out_weight, out_bias)
    assert out.shape == (batch, v_size)
    assert jnp.allclose(out, ref, atol=1e-5, rtol=1e-5), "mismatch vs reference"

    print("KERNEL_OK")
</pallas_src>

<mosaic_0001>
module attributes {stable_mosaic.version = 11 : i64} {
  func.func @cbow_kernel(%arg0: i32, %arg1: memref<8x8xi32, #tpu.memory_space<vmem>>, %arg2: memref<64x32xf32, #tpu.memory_space<vmem>>, %arg3: memref<32x64xf32, #tpu.memory_space<vmem>>, %arg4: memref<1x64xf32, #tpu.memory_space<vmem>>, %arg5: memref<8x64xf32, #tpu.memory_space<vmem>>) attributes {dimension_semantics = [#tpu.dimension_semantics<parallel>], iteration_bounds = array<i64: 1>, scalar_prefetch = 0 : i64, scratch_operands = 0 : i64, tpu.core_type = #tpu.core_type<tc>, window_params = [{transform_indices = @transform_0, window_bounds = array<i64: 8, 8>}, {pipeline_mode = #tpu.pipeline_mode<synchronous>, transform_indices = @transform_1, window_bounds = array<i64: 64, 32>}, {pipeline_mode = #tpu.pipeline_mode<synchronous>, transform_indices = @transform_2, window_bounds = array<i64: 32, 64>}, {pipeline_mode = #tpu.pipeline_mode<synchronous>, transform_indices = @transform_3, window_bounds = array<i64: 1, 64>}, {transform_indices = @transform_4, window_bounds = array<i64: 8, 64>}]} {
    %c0 = arith.constant 0 : index
    %c0_0 = arith.constant 0 : index
    %0 = vector.load %arg1[%c0, %c0_0] : memref<8x8xi32, #tpu.memory_space<vmem>>, vector<8x8xi32>
    %1 = tpu.iota {dimensions = array<i32: 1>} : vector<8x64xi32>
    %cst = arith.constant 0.000000e+00 : f32
    %2 = vector.broadcast %cst : f32 to vector<8x64xf32>
    %3 = vector.extract_strided_slice %0 {offsets = [0, 0], sizes = [8, 1], strides = [1, 1]} : vector<8x8xi32> to vector<8x1xi32>
    %4 = vector.broadcast %3 : vector<8x1xi32> to vector<8x64xi32>
    %5 = arith.cmpi eq, %1, %4 : vector<8x64xi32>
    %6 = arith.extui %5 : vector<8x64xi1> to vector<8x64xi32>
    %7 = arith.sitofp %6 : vector<8x64xi32> to vector<8x64xf32>
    %8 = arith.addf %2, %7 : vector<8x64xf32>
    %9 = vector.extract_strided_slice %0 {offsets = [0, 1], sizes = [8, 1], strides = [1, 1]} : vector<8x8xi32> to vector<8x1xi32>
    %10 = vector.broadcast %9 : vector<8x1xi32> to vector<8x64xi32>
    %11 = arith.cmpi eq, %1, %10 : vector<8x64xi32>
    %12 = arith.extui %11 : vector<8x64xi1> to vector<8x64xi32>
    %13 = arith.sitofp %12 : vector<8x64xi32> to vector<8x64xf32>
    %14 = arith.addf %8, %13 : vector<8x64xf32>
    %15 = vector.extract_strided_slice %0 {offsets = [0, 2], sizes = [8, 1], strides = [1, 1]} : vector<8x8xi32> to vector<8x1xi32>
    %16 = vector.broadcast %15 : vector<8x1xi32> to vector<8x64xi32>
    %17 = arith.cmpi eq, %1, %16 : vector<8x64xi32>
    %18 = arith.extui %17 : vector<8x64xi1> to vector<8x64xi32>
    %19 = arith.sitofp %18 : vector<8x64xi32> to vector<8x64xf32>
    %20 = arith.addf %14, %19 : vector<8x64xf32>
    %21 = vector.extract_strided_slice %0 {offsets = [0, 3], sizes = [8, 1], strides = [1, 1]} : vector<8x8xi32> to vector<8x1xi32>
    %22 = vector.broadcast %21 : vector<8x1xi32> to vector<8x64xi32>
    %23 = arith.cmpi eq, %1, %22 : vector<8x64xi32>
    %24 = arith.extui %23 : vector<8x64xi1> to vector<8x64xi32>
    %25 = arith.sitofp %24 : vector<8x64xi32> to vector<8x64xf32>
    %26 = arith.addf %20, %25 : vector<8x64xf32>
    %27 = vector.extract_strided_slice %0 {offsets = [0, 4], sizes = [8, 1], strides = [1, 1]} : vector<8x8xi32> to vector<8x1xi32>
    %28 = vector.broadcast %27 : vector<8x1xi32> to vector<8x64xi32>
    %29 = arith.cmpi eq, %1, %28 : vector<8x64xi32>
    %30 = arith.extui %29 : vector<8x64xi1> to vector<8x64xi32>
    %31 = arith.sitofp %30 : vector<8x64xi32> to vector<8x64xf32>
    %32 = arith.addf %26, %31 : vector<8x64xf32>
    %33 = vector.extract_strided_slice %0 {offsets = [0, 5], sizes = [8, 1], strides = [1, 1]} : vector<8x8xi32> to vector<8x1xi32>
    %34 = vector.broadcast %33 : vector<8x1xi32> to vector<8x64xi32>
    %35 = arith.cmpi eq, %1, %34 : vector<8x64xi32>
    %36 = arith.extui %35 : vector<8x64xi1> to vector<8x64xi32>
    %37 = arith.sitofp %36 : vector<8x64xi32> to vector<8x64xf32>
    %38 = arith.addf %32, %37 : vector<8x64xf32>
    %39 = vector.extract_strided_slice %0 {offsets = [0, 6], sizes = [8, 1], strides = [1, 1]} : vector<8x8xi32> to vector<8x1xi32>
    %40 = vector.broadcast %39 : vector<8x1xi32> to vector<8x64xi32>
    %41 = arith.cmpi eq, %1, %40 : vector<8x64xi32>
    %42 = arith.extui %41 : vector<8x64xi1> to vector<8x64xi32>
    %43 = arith.sitofp %42 : vector<8x64xi32> to vector<8x64xf32>
    %44 = arith.addf %38, %43 : vector<8x64xf32>
    %45 = vector.extract_strided_slice %0 {offsets = [0, 7], sizes = [8, 1], strides = [1, 1]} : vector<8x8xi32> to vector<8x1xi32>
    %46 = vector.broadcast %45 : vector<8x1xi32> to vector<8x64xi32>
    %47 = arith.cmpi eq, %1, %46 : vector<8x64xi32>
    %48 = arith.extui %47 : vector<8x64xi1> to vector<8x64xi32>
    %49 = arith.sitofp %48 : vector<8x64xi32> to vector<8x64xf32>
    %50 = arith.addf %44, %49 : vector<8x64xf32>
    %c0_1 = arith.constant 0 : index
    %c0_2 = arith.constant 0 : index
    %51 = vector.load %arg2[%c0_1, %c0_2] : memref<64x32xf32, #tpu.memory_space<vmem>>, vector<64x32xf32>
    %cst_3 = arith.constant dense<0.000000e+00> : vector<8x32xf32>
    %52 = tpu.matmul %50, %51, %cst_3 {dimension_numbers = #tpu.dot_dimension_numbers<[1], [0], [0], [1], [0, 0, 1, 1], [], []>} : vector<8x64xf32>, vector<64x32xf32>, vector<8x32xf32> -> vector<8x32xf32>
    %c0_4 = arith.constant 0 : index
    %c0_5 = arith.constant 0 : index
    %53 = vector.load %arg3[%c0_4, %c0_5] : memref<32x64xf32, #tpu.memory_space<vmem>>, vector<32x64xf32>
    %cst_6 = arith.constant dense<0.000000e+00> : vector<8x64xf32>
    %54 = tpu.matmul %52, %53, %cst_6 {dimension_numbers = #tpu.dot_dimension_numbers<[1], [0], [0], [1], [0, 0, 1, 1], [], []>} : vector<8x32xf32>, vector<32x64xf32>, vector<8x64xf32> -> vector<8x64xf32>
    %c0_7 = arith.constant 0 : index
    %c0_8 = arith.constant 0 : index
    %55 = vector.load %arg4[%c0_7, %c0_8] : memref<1x64xf32, #tpu.memory_space<vmem>>, vector<1x64xf32>
    %56 = vector.broadcast %55 : vector<1x64xf32> to vector<8x64xf32>
    %57 = arith.addf %54, %56 : vector<8x64xf32>
    %c0_9 = arith.constant 0 : index
    %c0_10 = arith.constant 0 : index
    %58 = vector.load %arg5[%c0_9, %c0_10] : memref<8x64xf32, #tpu.memory_space<vmem>>, vector<8x64xf32>
    tpu.vector_store %arg5[%c0_9, %c0_10], %57 {strides = array<i32>} : memref<8x64xf32, #tpu.memory_space<vmem>>, vector<8x64xf32>,
    return
  }
  func.func @transform_0(%arg0: i32) -> (i32, i32) {
    %c0_i32 = arith.constant 0 : i32
    %c0_i32_0 = arith.constant 0 : i32
    return %arg0, %c0_i32 : i32, i32
  }
  func.func @transform_1(%arg0: i32) -> (i32, i32) {
    %c0_i32 = arith.constant 0 : i32
    %c0_i32_0 = arith.constant 0 : i32
    %c0_i32_1 = arith.constant 0 : i32
    return %c0_i32, %c0_i32_0 : i32, i32
  }
  func.func @transform_2(%arg0: i32) -> (i32, i32) {
    %c0_i32 = arith.constant 0 : i32
    %c0_i32_0 = arith.constant 0 : i32
    %c0_i32_1 = arith.constant 0 : i32
    return %c0_i32, %c0_i32_0 : i32, i32
  }
  func.func @transform_3(%arg0: i32) -> (i32, i32) {
    %c0_i32 = arith.constant 0 : i32
    %c0_i32_0 = arith.constant 0 : i32
    %c0_i32_1 = arith.constant 0 : i32
    return %c0_i32, %c0_i32_0 : i32, i32
  }
  func.func @transform_4(%arg0: i32) -> (i32, i32) {
    %c0_i32 = arith.constant 0 : i32
    %c0_i32_0 = arith.constant 0 : i32
    return %arg0, %c0_i32 : i32, i32
  }
}

</mosaic_0001>

<bundles_post_ra>
// kernel: tpu_custom_call.1
= control target key start
LH: loop header
LB: loop body
LE: loop exit
PB: predicated region body
PF: predicated region fallthrough
CT: control target
= control target key end

     0   :  { %v377_v1 = vmov 2   ;;  %v378_v2 = vmov 0   ;;  %s468_s0 = inlined_call_operand.vmem [shape: s32[8,8], index: 0, kind: input, shape index: {}]   ;;  %s469_s1 = inlined_call_operand.vmem [shape: f32[64,32], index: 1, kind: input, shape index: {}]   ;;  %s470_s2 = inlined_call_operand.vmem [shape: f32[32,64], index: 2, kind: input, shape index: {}]   ;;  %s471_s3 = inlined_call_operand.vmem [shape: f32[1,64], index: 3, kind: input, shape index: {}]   ;;  %s472_s4 = inlined_call_operand.hbm [shape: f32[8,64], index: 4, kind: output, shape index: {}]  }
   0x1   :  { %v18_v0 = vld [vmem:[%s468_s0] sm:$0xff]  ;;  %346 = vset.pattern.permute.xlu1 %v377_v1  ;;  %344 = vset.pattern.permute.xlu0 %v378_v2 }
   0x2   :  { %9 = vsyncpa [#allocation3], 0  ;;  %36 = vperm.xlu1 %346, %v18_v0   ;;  %22 = vperm.xlu0 %344, %v18_v0   ;;  %v379_v3 = vmov 3   ;;  %v380_v4 = vmov 1   ;;  %v77_v5 = vld [vmem:[%s469_s1] sm:$0xff]  ;;  %v78_v6 = vld [vmem:[%s469_s1 + $0x8] sm:$0xff]  ;;  %v19_v29 = vlaneseq }
   0x3   :  { %v315_v7 = vpack.c.bf16 %v78_v6, %v77_v5  ;;  %v381_v8 = vmov 0.0|0.0   ;;  %v382_v9 = vmov 4   ;;  %v383_v10 = vmov 5   ;;  %v79_v11 = vld [vmem:[%s469_s1 + $0x10] sm:$0xff]  ;;  %v80_v12 = vld [vmem:[%s469_s1 + $0x18] sm:$0xff]  ;;  %v81_v15 = vld [vmem:[%s469_s1 + $0x20] sm:$0xff] }
   0x4   :  { %314 = vmatprep.subr.bf16.mxu0 %v381_v8  ;;  %326 = vmatprep.subr.bf16.mxu1 %v381_v8  ;;  %v318_v13 = vpack.c.bf16 %v80_v12, %v79_v11  ;;  %v384_v14 = vmov 6   ;;  %v82_v16 = vld [vmem:[%s469_s1 + $0x28] sm:$0xff]  ;;  %v385_v17 = vmov 7   ;;  %v83_v19 = vld [vmem:[%s469_s1 + $0x30] sm:$0xff]  ;;  %v84_v20 = vld [vmem:[%s469_s1 + $0x38] sm:$0xff]  ;;  %vm386_vm0 = vmmov 0  }
   0x5   :  { %316 = vmatpush3.bf16.msra.mxu0 %v315_v7  ;;  %v321_v18 = vpack.c.bf16 %v82_v16, %v81_v15  ;;  %v324_v21 = vpack.c.bf16 %v84_v20, %v83_v19  ;;  %v387_v22 = vmov 0.0   ;;  %v159_v23 = vld [vmem:[%s470_s2] sm:$0xff]  ;;  %v160_v24 = vld [vmem:[%s470_s2 + $0x8] sm:$0xff]  ;;  %v161_v25 = vld [vmem:[%s470_s2 + $0x10] sm:$0xff]  ;;  %v20_v32 = vand.u32 127, %v19_v29  ;;  %s388_s14 = smov [#allocation2]  }
   0x6   :  { %347 = vset.pattern.permute.xlu1 %v379_v3  ;;  %345 = vset.pattern.permute.xlu0 %v380_v4  ;;  %v327_v26 = vpack.c.bf16 %v160_v24, %v159_v23  ;;  %v162_v27 = vld [vmem:[%s470_s2 + $0x18] sm:$0xff]  ;;  %vm85_vm9 = vcmask 523264   ;;  %vm170_vm10 = vcmask 261120   ;;  %v268_v56 = vld [vmem:[%s471_s3] ss:$0 sm:$0xff]  ;;  %s251_s15 = sshll.u32 %s388_s14, 4  ;;  %s252_s15 = int_to_ptr.vmem [resolvable:$true] %s251_s15 }
   0x7   :  { %43 = vperm.xlu1 %347, %v18_v0   ;;  %29 = vperm.xlu0 %345, %v18_v0   ;;  %v330_v28 = vpack.c.bf16 %v162_v27, %v161_v25  ;;  %s353_s16 = scalar_lea.vmem %s252_s15, 128  ;;  %p358_p1 = scmp.lt.s32.totalorder %s252_s15, %s252_s15 }
   0x8   :  { %317 = vmatprep.subr.bf16.mxu0 %v381_v8  ;;  %300 = vmatprep.mubr.msk.f32.mxu0 %vm386_vm0, %v387_v22  ;;  %p354_p0 = scmp.ne.s32.totalorder %s252_s15, %s353_s16  ;;  %p359_p2 = scmp.lt.s32.totalorder %s353_s16, %s353_s16 }
   0x9   :  { %319 = vmatpush3.bf16.msra.mxu0 %v318_v13  ;;  %311 = vmatprep.mubr.msk.f32.mxu1 %vm386_vm0, %v387_v22 }
   0xa   :  { %320 = vmatprep.subr.bf16.mxu0 %v381_v8  ;;  %328 = vmatpush3.bf16.msra.mxu1 %v327_v26  ;;  %p360_p3 = por %p359_p2, %p358_p1 }
   0xb   :  { %348 = vset.pattern.permute.xlu1 %v382_v9  ;;  %349 = vset.pattern.permute.xlu0 %v383_v10 }
   0xc   :  { %50 = vperm.xlu1 %348, %v18_v0   ;;  %57 = vperm.xlu0 %349, %v18_v0   ;;  %p361_p4 = pnand %p360_p3, %p354_p0 }
   0xd   :  { %322 = vmatpush3.bf16.msra.mxu0 %v321_v18  ;;  %329 = vmatprep.subr.bf16.mxu1 %v381_v8 }
   0xe   :  { %323 = vmatprep.subr.bf16.mxu0 %v381_v8  ;;  %331 = vmatpush3.bf16.msra.mxu1 %v330_v28 }
  0x10   :  { %350 = vset.pattern.permute.xlu1 %v384_v14  ;;  %352 = vset.pattern.permute.xlu0 %v385_v17 }
  0x11   :  { %64 = vperm.xlu1 %350, %v18_v0   ;;  %325 = vmatpush3.bf16.msra.mxu0 %v324_v21 }
  0x15   :  { %351 = vset.pattern.permute.xlu1 %v385_v17 }
  0x16   :  { %71 = vperm.xlu1 %351, %v18_v0  }
  0x81   :  { %v37_v30 = vpop.permute.xlu1 %36  ;;  %v23_v31 = vpop.permute.xlu0 %22 }
  0x82   :  { %vm24_vm1 = vcmp.eq.s32.totalorder %v20_v32, %v23_v31  ;;  %vm38_vm2 = vcmp.eq.s32.totalorder %v20_v32, %v37_v30 }
  0x83   :  { %v259_v35 = vsel %vm24_vm1, 1.0, %v387_v22  ;;  %v261_v38 = vsel %vm38_vm2, 1.0, %v387_v22 }
  0x86   :  { %v44_v33 = vpop.permute.xlu1 %43  ;;  %v30_v34 = vpop.permute.xlu0 %29 }
  0x87   :  { %vm31_vm3 = vcmp.eq.s32.totalorder %v20_v32, %v30_v34  ;;  %vm45_vm4 = vcmp.eq.s32.totalorder %v20_v32, %v44_v33 }
  0x88   :  { %v260_v36 = vsel %vm31_vm3, 1.0, %v387_v22  ;;  %v262_v42 = vsel %vm45_vm4, 1.0, %v387_v22 }
  0x89   :  { %v34_v37 = vadd.f32 %v260_v36, %v259_v35 }
  0x8b   :  { %v41_v39 = vadd.f32 %v261_v38, %v34_v37  ;;  %v51_v40 = vpop.permute.xlu1 %50  ;;  %v58_v41 = vpop.permute.xlu0 %57 }
  0x8c   :  { %vm52_vm5 = vcmp.eq.s32.totalorder %v20_v32, %v51_v40  ;;  %vm59_vm6 = vcmp.eq.s32.totalorder %v20_v32, %v58_v41 }
  0x8d   :  { %v48_v43 = vadd.f32 %v262_v42, %v41_v39  ;;  %v263_v44 = vsel %vm52_vm5, 1.0, %v387_v22  ;;  %v264_v46 = vsel %vm59_vm6, 1.0, %v387_v22 }
  0x8f   :  { %v55_v45 = vadd.f32 %v263_v44, %v48_v43 }
  0x90   :  { %v65_v47 = vpop.permute.xlu1 %64 }
  0x91   :  { %vm66_vm7 = vcmp.eq.s32.totalorder %v20_v32, %v65_v47  ;;  %v62_v48 = vadd.f32 %v264_v46, %v55_v45 }
  0x92   :  { %v265_v49 = vsel %vm66_vm7, 1.0, %v387_v22 }
  0x93   :  { %v69_v51 = vadd.f32 %v265_v49, %v62_v48 }
  0x95   :  { %v72_v50 = vpop.permute.xlu1 %71 }
  0x96   :  { %vm73_vm8 = vcmp.eq.s32.totalorder %v20_v32, %v72_v50 }
  0x97   :  { %v266_v52 = vsel %vm73_vm8, 1.0, %v387_v22 }
  0x98   :  { %v76_v53 = vadd.f32 %v266_v52, %v69_v51 }
  0x9a   :  { %301 = vmatmul.mubr.msk.f32.vlgmr.msra.gmra.mrb[0].mxu0 %vm85_vm9, %v76_v53 }
 0x16d   :  { %v155_v54 = vpop.f32.mrb[0].mxu0 }
 0x16e   :  { %v302_v55 = vpop.f32.mrb[1].mxu0  ;;  %312 = vmatmul.mubr.msk.f32.vlgmr.msra.gmra.mrb[0].mxu1 %vm170_vm10, %v155_v54 }
 0x241   :  { %v240_v57 = vpop.f32.mrb[0].mxu1 }
 0x242   :  { %v241_v58 = vadd.f32 %v268_v56, %v240_v57  ;;  %v313_v59 = vpop.f32.mrb[1].mxu1 }
 0x244   :  { %244 = vst.msk [vmem:[#allocation2] sm:$0xff] %vm85_vm9, %v241_v58 }
 0x245   :  { %364 = shalt.err (!%p361_p4)
}
 0x246   :  { %s365_s19 = scalar_lea.hbm %s472_s4, 128 }
 0x247   :  { %p366_p5 = scmp.ne.s32.totalorder %s472_s4, %s365_s19  ;;  %p369_p6 = scmp.lt.u32.totalorder %s365_s19, %s472_s4 }
 0x249   :  { %p371_p7 = pnand %p369_p6, %p366_p5 }
 0x24b   :  { %374 = shalt.err (!%p371_p7)
}
 0x24c   :  { %254 = dma.vmem_to_hbm [thread:$0]  %s252_s15, 128, %s472_s4, [#allocation3]  }
 0x24d   :  { %375 = dma.done.wait [#allocation3], 128  }
 0x24e   :  { %376 = vsyncadd [#allocation3], 4294967168 }
 0x24f   :  { %258 = vsyncpa [#allocation3], 1 }

</bundles_post_ra>
